<compile_context>
chip_gen: v7x
topology: tpu7x:2x2x1
jax: 0.10.0
libtpu: 0.0.40
codegen_flags: <defaults>
</compile_context>

<pallas_src>
import functools

import jax
import jax.numpy as jnp
from jax.experimental import pallas as pl
from jax.experimental.pallas import tpu as pltpu


def _round_up(x, m):
    return ((x + m - 1) // m) * m


def contrastive_head_kernel(x_ref, w1_ref, b1_ref, w2_ref, b2_ref, o_ref):
    # hidden = relu(x @ W1 + b1)   (bf16 MXU inputs, f32 accumulation)
    x = x_ref[...].astype(jnp.bfloat16)
    w1 = w1_ref[...].astype(jnp.bfloat16)
    h = jnp.dot(x, w1, preferred_element_type=jnp.float32) + b1_ref[...]
    h = jnp.maximum(h, 0.0)

    # feat = hidden @ W2 + b2
    w2 = w2_ref[...].astype(jnp.bfloat16)
    f = jnp.dot(h.astype(jnp.bfloat16), w2, preferred_element_type=jnp.float32)
    f = f + b2_ref[...]

    # F.normalize(feat, dim=1): feat / max(||feat||, 1e-12)
    #   == feat * rsqrt(max(||feat||^2, 1e-24))  -- one EUP rsqrt + VPU mul.
    sumsq = jnp.sum(f * f, axis=-1, keepdims=True)
    inv_norm = jax.lax.rsqrt(jnp.maximum(sumsq, 1e-24))
    o_ref[...] = (f * inv_norm).astype(o_ref.dtype)


@functools.partial(jax.jit, static_argnames=("block_rows",))
def contrastive_head(x, w1, b1, w2, b2, *, block_rows=512):
    """x: [N, dim_in]; w1: [dim_in, dim_in] (transposed); b1: [dim_in];
       w2: [dim_in, feat_dim] (transposed); b2: [feat_dim]."""
    n, dim_in = x.shape
    feat_dim = w2.shape[1]

    # Row tile: multiple of 8 sublanes, capped at block_rows (256-1024 is the MXU
    # sweet spot; at dim_in=32/feat_dim=16 even huge tiles are far below the
    # v7x 64 MiB / scoped 32 MiB VMEM budgets).
    tm = min(block_rows, _round_up(n, 8))
    n_pad = _round_up(n, tm)
    if n_pad != n:
        x = jnp.pad(x, ((0, n_pad - n), (0, 0)))

    b1_2d = b1.reshape(1, dim_in)
    b2_2d = b2.reshape(1, feat_dim)

    out = pl.pallas_call(
        contrastive_head_kernel,
        out_shape=jax.ShapeDtypeStruct((n_pad, feat_dim), x.dtype),
        grid=(n_pad // tm,),
        in_specs=[
            # x: streamed one row-tile per grid step (auto double-buffered).
            pl.BlockSpec((tm, dim_in), lambda i: (i, 0)),
            # Weights / biases: same block every step -> stay VMEM-resident.
            pl.BlockSpec((dim_in, dim_in), lambda i: (0, 0)),
            pl.BlockSpec((1, dim_in), lambda i: (0, 0)),
            pl.BlockSpec((dim_in, feat_dim), lambda i: (0, 0)),
            pl.BlockSpec((1, feat_dim), lambda i: (0, 0)),
        ],
        out_specs=pl.BlockSpec((tm, feat_dim), lambda i: (i, 0)),
        compiler_params=pltpu.CompilerParams(
            dimension_semantics=("parallel",)),  # shard row tiles across TCs (v7x)
    )(x, w1, b1_2d, w2, b2_2d)

    return out[:n] if n_pad != n else out


def reference_f32(x, w1, b1, w2, b2):
    """Pure-f32 reference matching the original PyTorch module."""
    h = jnp.maximum(x @ w1 + b1, 0.0)
    f = h @ w2 + b2
    norm = jnp.sqrt(jnp.sum(f * f, axis=1, keepdims=True))
    return f / jnp.maximum(norm, 1e-12)


def reference_bf16(x, w1, b1, w2, b2):
    """Reference matching the kernel's bf16-input / f32-accumulate MXU path."""
    bf = jnp.bfloat16
    h = jnp.dot(x.astype(bf), w1.astype(bf), preferred_element_type=jnp.float32) + b1
    h = jnp.maximum(h, 0.0)
    f = jnp.dot(h.astype(bf), w2.astype(bf), preferred_element_type=jnp.float32) + b2
    sumsq = jnp.sum(f * f, axis=1, keepdims=True)
    return f * jax.lax.rsqrt(jnp.maximum(sumsq, 1e-24))


if __name__ == "__main__":
    DIM_IN, FEAT_DIM = 32, 16

    key = jax.random.PRNGKey(0)
    kx, kw1, kb1, kw2, kb2, kx2 = jax.random.split(key, 6)

    # nn.Linear(dim_in, dim_in): weight [dim_in, dim_in]; stored transposed [in, out].
    w1 = jax.random.normal(kw1, (DIM_IN, DIM_IN), dtype=jnp.float32) * 0.1
    b1 = jax.random.normal(kb1, (DIM_IN,), dtype=jnp.float32) * 0.1
    # nn.Linear(dim_in, feat_dim): weight [feat_dim, dim_in]; stored transposed [in, out].
    w2 = jax.random.normal(kw2, (DIM_IN, FEAT_DIM), dtype=jnp.float32) * 0.1
    b2 = jax.random.normal(kb2, (FEAT_DIM,), dtype=jnp.float32) * 0.1

    # Case 1: module-sized batch [8, 32] -- single grid step.
    x = jax.random.normal(kx, (8, DIM_IN), dtype=jnp.float32)
    out = jax.block_until_ready(contrastive_head(x, w1, b1, w2, b2))
    assert out.shape == (8, FEAT_DIM)
    assert jnp.allclose(out, reference_bf16(x, w1, b1, w2, b2), atol=1e-4, rtol=1e-4)
    assert jnp.allclose(out, reference_f32(x, w1, b1, w2, b2), atol=3e-2, rtol=3e-2)

    # Case 2: batch not a multiple of the row tile -> exercises the multi-step grid,
    # resident-weight index_maps, megacore semantics and the pad/slice path.
    x2 = jax.random.normal(kx2, (80, DIM_IN), dtype=jnp.float32)
    out2 = jax.block_until_ready(contrastive_head(x2, w1, b1, w2, b2, block_rows=32))
    assert out2.shape == (80, FEAT_DIM)
    assert jnp.allclose(out2, reference_bf16(x2, w1, b1, w2, b2), atol=1e-4, rtol=1e-4)
    assert jnp.allclose(out2, reference_f32(x2, w1, b1, w2, b2), atol=3e-2, rtol=3e-2)

    print("KERNEL_OK")
</pallas_src>

<mosaic_0001>
module attributes {stable_mosaic.version = 11 : i64} {
  func.func @contrastive_head_kernel(%arg0: i32, %arg1: memref<8x32xf32, #tpu.memory_space<vmem>>, %arg2: memref<32x32xf32, #tpu.memory_space<vmem>>, %arg3: memref<1x32xf32, #tpu.memory_space<vmem>>, %arg4: memref<32x16xf32, #tpu.memory_space<vmem>>, %arg5: memref<1x16xf32, #tpu.memory_space<vmem>>, %arg6: memref<8x16xf32, #tpu.memory_space<vmem>>) attributes {dimension_semantics = [#tpu.dimension_semantics<parallel>], iteration_bounds = array<i64: 1>, scalar_prefetch = 0 : i64, scratch_operands = 0 : i64, tpu.core_type = #tpu.core_type<tc>, window_params = [{transform_indices = @transform_0, window_bounds = array<i64: 8, 32>}, {pipeline_mode = #tpu.pipeline_mode<synchronous>, transform_indices = @transform_1, window_bounds = array<i64: 32, 32>}, {pipeline_mode = #tpu.pipeline_mode<synchronous>, transform_indices = @transform_2, window_bounds = array<i64: 1, 32>}, {pipeline_mode = #tpu.pipeline_mode<synchronous>, transform_indices = @transform_3, window_bounds = array<i64: 32, 16>}, {pipeline_mode = #tpu.pipeline_mode<synchronous>, transform_indices = @transform_4, window_bounds = array<i64: 1, 16>}, {transform_indices = @transform_5, window_bounds = array<i64: 8, 16>}]} {
    %c0 = arith.constant 0 : index
    %c0_0 = arith.constant 0 : index
    %0 = vector.load %arg1[%c0, %c0_0] : memref<8x32xf32, #tpu.memory_space<vmem>>, vector<8x32xf32>
    %1 = arith.truncf %0 : vector<8x32xf32> to vector<8x32xbf16>
    %c0_1 = arith.constant 0 : index
    %c0_2 = arith.constant 0 : index
    %2 = vector.load %arg2[%c0_1, %c0_2] : memref<32x32xf32, #tpu.memory_space<vmem>>, vector<32x32xf32>
    %3 = arith.truncf %2 : vector<32x32xf32> to vector<32x32xbf16>
    %cst = arith.constant dense<0.000000e+00> : vector<8x32xf32>
    %4 = tpu.matmul %1, %3, %cst {dimension_numbers = #tpu.dot_dimension_numbers<[1], [0], [0], [1], [0, 0, 1, 1], [], []>} : vector<8x32xbf16>, vector<32x32xbf16>, vector<8x32xf32> -> vector<8x32xf32>
    %c0_3 = arith.constant 0 : index
    %c0_4 = arith.constant 0 : index
    %5 = vector.load %arg3[%c0_3, %c0_4] : memref<1x32xf32, #tpu.memory_space<vmem>>, vector<1x32xf32>
    %6 = vector.broadcast %5 : vector<1x32xf32> to vector<8x32xf32>
    %7 = arith.addf %4, %6 : vector<8x32xf32>
    %cst_5 = arith.constant 0.000000e+00 : f32
    %8 = vector.broadcast %cst_5 : f32 to vector<8x32xf32>
    %9 = arith.maximumf %7, %8 : vector<8x32xf32>
    %c0_6 = arith.constant 0 : index
    %c0_7 = arith.constant 0 : index
    %10 = vector.load %arg4[%c0_6, %c0_7] : memref<32x16xf32, #tpu.memory_space<vmem>>, vector<32x16xf32>
    %11 = arith.truncf %10 : vector<32x16xf32> to vector<32x16xbf16>
    %12 = arith.truncf %9 : vector<8x32xf32> to vector<8x32xbf16>
    %cst_8 = arith.constant dense<0.000000e+00> : vector<8x16xf32>
    %13 = tpu.matmul %12, %11, %cst_8 {dimension_numbers = #tpu.dot_dimension_numbers<[1], [0], [0], [1], [0, 0, 1, 1], [], []>} : vector<8x32xbf16>, vector<32x16xbf16>, vector<8x16xf32> -> vector<8x16xf32>
    %c0_9 = arith.constant 0 : index
    %c0_10 = arith.constant 0 : index
    %14 = vector.load %arg5[%c0_9, %c0_10] : memref<1x16xf32, #tpu.memory_space<vmem>>, vector<1x16xf32>
    %15 = vector.broadcast %14 : vector<1x16xf32> to vector<8x16xf32>
    %16 = arith.addf %13, %15 : vector<8x16xf32>
    %17 = arith.mulf %16, %16 : vector<8x16xf32>
    %cst_11 = arith.constant dense<0.000000e+00> : vector<8xf32>
    %18 = vector.multi_reduction <add>, %17, %cst_11 [1] : vector<8x16xf32> to vector<8xf32>
    %19 = vector.shape_cast %18 : vector<8xf32> to vector<8x1xf32>
    %cst_12 = arith.constant 1.000000e-24 : f32
    %20 = vector.broadcast %cst_12 : f32 to vector<8x1xf32>
    %21 = arith.maximumf %19, %20 : vector<8x1xf32>
    %22 = math.rsqrt %21 : vector<8x1xf32>
    %23 = vector.broadcast %22 : vector<8x1xf32> to vector<8x16xf32>
    %24 = arith.mulf %16, %23 : vector<8x16xf32>
    %c0_13 = arith.constant 0 : index
    %c0_14 = arith.constant 0 : index
    %25 = vector.load %arg6[%c0_13, %c0_14] : memref<8x16xf32, #tpu.memory_space<vmem>>, vector<8x16xf32>
    tpu.vector_store %arg6[%c0_13, %c0_14], %24 {strides = array<i32>} : memref<8x16xf32, #tpu.memory_space<vmem>>, vector<8x16xf32>,
    return
  }
  func.func @transform_0(%arg0: i32) -> (i32, i32) {
    %c0_i32 = arith.constant 0 : i32
    %c0_i32_0 = arith.constant 0 : i32
    return %arg0, %c0_i32 : i32, i32
  }
  func.func @transform_1(%arg0: i32) -> (i32, i32) {
    %c0_i32 = arith.constant 0 : i32
    %c0_i32_0 = arith.constant 0 : i32
    %c0_i32_1 = arith.constant 0 : i32
    return %c0_i32, %c0_i32_0 : i32, i32
  }
  func.func @transform_2(%arg0: i32) -> (i32, i32) {
    %c0_i32 = arith.constant 0 : i32
    %c0_i32_0 = arith.constant 0 : i32
    %c0_i32_1 = arith.constant 0 : i32
    return %c0_i32, %c0_i32_0 : i32, i32
  }
  func.func @transform_3(%arg0: i32) -> (i32, i32) {
    %c0_i32 = arith.constant 0 : i32
    %c0_i32_0 = arith.constant 0 : i32
    %c0_i32_1 = arith.constant 0 : i32
    return %c0_i32, %c0_i32_0 : i32, i32
  }
  func.func @transform_4(%arg0: i32) -> (i32, i32) {
    %c0_i32 = arith.constant 0 : i32
    %c0_i32_0 = arith.constant 0 : i32
    %c0_i32_1 = arith.constant 0 : i32
    return %c0_i32, %c0_i32_0 : i32, i32
  }
  func.func @transform_5(%arg0: i32) -> (i32, i32) {
    %c0_i32 = arith.constant 0 : i32
    %c0_i32_0 = arith.constant 0 : i32
    return %arg0, %c0_i32 : i32, i32
  }
}

</mosaic_0001>

<bundles_post_ra>
// kernel: contrastive_head.1
= control target key start
LH: loop header
LB: loop body
LE: loop exit
PB: predicated region body
PF: predicated region fallthrough
CT: control target
= control target key end

     0   :  { %v217_v3 = vmov 0.0   ;;  %vm218_vm0 = vmmov 0   ;;  %s297_s0 = inlined_call_operand.vmem [shape: f32[8,32], index: 0, kind: input, shape index: {}]   ;;  %s298_s1 = inlined_call_operand.vmem [shape: f32[32,32], index: 1, kind: input, shape index: {}]   ;;  %s299_s2 = inlined_call_operand.vmem [shape: f32[1,32], index: 2, kind: input, shape index: {}]   ;;  %s300_s3 = inlined_call_operand.vmem [shape: f32[32,16], index: 3, kind: input, shape index: {}]   ;;  %s301_s4 = inlined_call_operand.vmem [shape: f32[1,16], index: 4, kind: input, shape index: {}]   ;;  %s302_s5 = inlined_call_operand.hbm [shape: f32[8,16], index: 5, kind: output, shape index: {}]  }
   0x1   :  { %v24_v0 = vld [vmem:[%s298_s1] sm:$0xff]  ;;  %v25_v1 = vld [vmem:[%s298_s1 + $0x8] sm:$0xff]  ;;  %v26_v2 = vld [vmem:[%s298_s1 + $0x10] sm:$0xff]  ;;  %172 = vmatprep.subr.bf16.mxu0 %v217_v3  ;;  %176 = vmatprep.mubr.msk.bf16.mxu0 %vm218_vm0, %v217_v3 }
   0x2   :  { %v28_v4 = vpack.c.bf16 %v25_v1, %v24_v0  ;;  %v27_v5 = vld [vmem:[%s298_s1 + $0x18] sm:$0xff]  ;;  %180 = vmatprep.subr.bf16.mxu1 %v217_v3  ;;  %184 = vmatprep.mubr.msk.bf16.mxu1 %vm218_vm0, %v217_v3 }
   0x3   :  { %10 = vsyncpa [#allocation3], 0  ;;  %v29_v6 = vpack.c.bf16 %v27_v5, %v26_v2  ;;  %v22_v7 = vld [vmem:[%s297_s0] sm:$0xff]  ;;  %vm37_vm1 = vcmask 261120   ;;  %v83_v10 = vld [vmem:[%s300_s3 + $0x8] sm:$0xff]  ;;  %vm140_vm2 = vcmask 130048  }
   0x4   :  { %173 = vmatpush3.bf16.msra.mxu0 %v28_v4  ;;  %v23_v8 = vpack.c.bf16 %v22_v7, %v22_v7  ;;  %v82_v9 = vld [vmem:[%s300_s3] sm:$0xff]  ;;  %v84_v12 = vld [vmem:[%s300_s3 + $0x10] sm:$0xff]  ;;  %v85_v13 = vld [vmem:[%s300_s3 + $0x18] sm:$0xff] }
   0x5   :  { %174 = vmatprep.subr.bf16.mxu0 %v217_v3  ;;  %v86_v11 = vpack.c.bf16 %v83_v10, %v82_v9  ;;  %v87_v14 = vpack.c.bf16 %v85_v13, %v84_v12  ;;  %v162_v15 = vld [vmem:[%s299_s2] ss:$0 sm:$0xff]  ;;  %s219_s2 = smov [#allocation2]  }
   0x6   :  { %v164_v23 = vld [vmem:[%s301_s4] ss:$0 sm:$0xff]  ;;  %s154_s3 = sshll.u32 %s219_s2, 4  ;;  %s155_s3 = int_to_ptr.vmem [resolvable:$true] %s154_s3 }
   0x7   :  { %181 = vmatpush3.bf16.msra.mxu1 %v86_v11  ;;  %s193_s13 = scalar_lea.vmem %s155_s3, 128  ;;  %p198_p1 = scmp.lt.s32.totalorder %s155_s3, %s155_s3 }
   0x8   :  { %175 = vmatpush3.bf16.msra.mxu0 %v29_v6  ;;  %182 = vmatprep.subr.bf16.mxu1 %v217_v3  ;;  %p194_p0 = scmp.ne.s32.totalorder %s155_s3, %s193_s13  ;;  %p199_p2 = scmp.lt.s32.totalorder %s193_s13, %s193_s13 }
   0xa   :  { %p200_p3 = por %p199_p2, %p198_p1 }
   0xb   :  { %177 = vmatmul.mubr.msk.bf16.vlgmr.msra.gmra.mrb[0].mxu0 %vm37_vm1, %v23_v8  ;;  %183 = vmatpush3.bf16.msra.mxu1 %v87_v14 }
   0xc   :  { %p201_p4 = pnand %p200_p3, %p194_p0 }
  0xde   :  { %v75_v16 = vpop.f32.mrb[0].mxu0 }
  0xdf   :  { %v76_v17 = vadd.f32 %v162_v15, %v75_v16  ;;  %v178_v18 = vpop.f32.mrb[1].mxu0 }
  0xe0   :  { %v78_v19 = vpop.f32.mrb[2].mxu0 }
  0xe1   :  { %v81_v20 = vmax.f32 %v76_v17, 0.0  ;;  %v179_v21 = vpop.f32.mrb[3].mxu0 }
  0xe3   :  { %v88_v22 = vpack.c.bf16 %v81_v20, %v81_v20 }
  0xe5   :  { %185 = vmatmul.mubr.msk.bf16.vlgmr.msra.gmra.mrb[0].mxu1 %vm37_vm1, %v88_v22 }
 0x1b8   :  { %v133_v24 = vpop.f32.mrb[0].mxu1 }
 0x1b9   :  { %v134_v25 = vadd.f32 %v164_v23, %v133_v24  ;;  %v186_v26 = vpop.f32.mrb[1].mxu1 }
 0x1ba   :  { %v136_v27 = vpop.f32.mrb[2].mxu1 }
 0x1bb   :  { %v187_v28 = vpop.f32.mrb[3].mxu1  ;;  %v139_v29 = vmul.f32 %v134_v25, %v134_v25 }
 0x1bd   :  { %v141_v30 = vsel %vm140_vm2, %v139_v29, 0.0 }
 0x1be   :  { %142 = vadd.xlane.f32.xlu0 %v141_v30 }
 0x24b   :  { %v143_v31 = vpop.xlane.xlu0 %142 }
 0x24c   :  { %v144_v32 = vmax.f32 %v143_v31, 1e-24 }
 0x24e   :  { %191 = vrsqrt.f32 %v144_v32 }
 0x258   :  { %v192_v33 = vpop.eup %191 }
 0x259   :  { %v146_v34 = vmul.f32 %v192_v33, %v134_v25 }
 0x25b   :  { %147 = vst.msk [vmem:[#allocation2] sm:$0xff] %vm140_vm2, %v146_v34 }
 0x25c   :  { %204 = shalt.err (!%p201_p4)
}
 0x25d   :  { %s205_s15 = scalar_lea.hbm %s302_s5, 128 }
 0x25e   :  { %p206_p5 = scmp.ne.s32.totalorder %s302_s5, %s205_s15  ;;  %p209_p6 = scmp.lt.u32.totalorder %s205_s15, %s302_s5 }
 0x260   :  { %p211_p7 = pnand %p209_p6, %p206_p5 }
 0x262   :  { %214 = shalt.err (!%p211_p7)
}
 0x263   :  { %157 = dma.vmem_to_hbm [thread:$0]  %s155_s3, 128, %s302_s5, [#allocation3]  }
 0x264   :  { %215 = dma.done.wait [#allocation3], 128  }
 0x265   :  { %216 = vsyncadd [#allocation3], 4294967168 }
 0x266   :  { %161 = vsyncpa [#allocation3], 1 }

</bundles_post_ra>
